<compile_context>
chip_gen: v7x
topology: tpu7x:2x2x1
jax: 0.10.0
libtpu: 0.0.40
codegen_flags: <defaults>
</compile_context>

<pallas_src>
import functools

import jax
import jax.numpy as jnp
from jax.experimental import pallas as pl
from jax.experimental.pallas import tpu as pltpu

STATE_DIM = 29
ACTION_DIM = 8
HIDDEN = 256


def _round_up(n, m):
    return ((n + m - 1) // m) * m


def _cdiv(a, b):
    return (a + b - 1) // b


def actor_kernel(x_ref, w1_ref, b1_ref, w2_ref, b2_ref, w3_ref, b3_ref, o_ref):
    # x tile: (tm, 29) f32; weights bf16; biases f32; output (tm, 8) f32.
    x = x_ref[...].astype(jnp.bfloat16)
    a1 = jnp.dot(x, w1_ref[...], preferred_element_type=jnp.float32) + b1_ref[...]
    h1 = jnp.tanh(a1.astype(jnp.bfloat16))        # bf16 tanh -> packed EUP path (v6e/v7x)
    a2 = jnp.dot(h1, w2_ref[...], preferred_element_type=jnp.float32) + b2_ref[...]
    h2 = jnp.tanh(a2.astype(jnp.bfloat16))
    a3 = jnp.dot(h2, w3_ref[...], preferred_element_type=jnp.float32) + b3_ref[...]
    h3 = jnp.tanh(a3)                             # final tanh in f32 (output precision)
    # Output scale 0.5 applied AFTER tanh (matches `x / 2` in the PyTorch module).
    o_ref[...] = (h3 * 0.5).astype(o_ref.dtype)


def prepare_params(params_f32):
    """One-time transform: fp32 (in,out)-layout params -> bf16 kernel weights."""
    w1, b1, w2, b2, w3, b3 = params_f32
    return (w1.astype(jnp.bfloat16), b1.astype(jnp.float32),
            w2.astype(jnp.bfloat16), b2.astype(jnp.float32),
            w3.astype(jnp.bfloat16), b3.astype(jnp.float32))


@functools.partial(jax.jit, static_argnames=("tile_m", "num_splits"))
def actor_forward(x, kernel_params, *, tile_m=1024, num_splits=1):
    """x: (batch, 29) f32 -> (batch, 8) f32 actions in [-0.5, 0.5].

    num_splits: pass 2 on v7x so a single-tile batch still yields >=2 grid steps
    and dimension_semantics=("parallel",) shards them across both TensorCores.
    """
    w1, b1, w2, b2, w3, b3 = kernel_params
    batch = x.shape[0]

    # Balance tiles (avoid an almost-empty last tile) and honor num_splits.
    n_tiles = max(_cdiv(batch, tile_m), num_splits if batch > 8 else 1)
    tm = _round_up(_cdiv(batch, n_tiles), 8)
    grid = _cdiv(batch, tm)

    const = lambda i: (0, 0)   # weights/biases: same block every step -> stay resident
    out = pl.pallas_call(
        actor_kernel,
        out_shape=jax.ShapeDtypeStruct((batch, ACTION_DIM), jnp.float32),
        grid_spec=pltpu.PrefetchScalarGridSpec(
            num_scalar_prefetch=0,
            grid=(grid,),
            in_specs=[
                pl.BlockSpec((tm, STATE_DIM), lambda i: (i, 0)),   # x tile (ragged tail masked)
                pl.BlockSpec((STATE_DIM, HIDDEN), const),          # w1
                pl.BlockSpec((1, HIDDEN), const),                  # b1
                pl.BlockSpec((HIDDEN, HIDDEN), const),             # w2
                pl.BlockSpec((1, HIDDEN), const),                  # b2
                pl.BlockSpec((HIDDEN, ACTION_DIM), const),         # w3 (narrow N=8 output)
                pl.BlockSpec((1, ACTION_DIM), const),              # b3
            ],
            out_specs=pl.BlockSpec((tm, ACTION_DIM), lambda i: (i, 0)),
        ),
        compiler_params=pltpu.CompilerParams(
            dimension_semantics=("parallel",),     # megacore sharding when grid >= 2
        ),
    )(x, w1, b1, w2, b2, w3, b3)
    return out


def init_params(key):
    """Deterministic init mimicking nn.Linear default (uniform +/- 1/sqrt(fan_in))."""
    ks = jax.random.split(key, 6)

    def linear(kw, kb, fan_in, fan_out):
        bound = 1.0 / jnp.sqrt(jnp.float32(fan_in))
        w = jax.random.uniform(kw, (fan_in, fan_out), jnp.float32, -bound, bound)
        b = jax.random.uniform(kb, (1, fan_out), jnp.float32, -bound, bound)
        return w, b

    w1, b1 = linear(ks[0], ks[1], STATE_DIM, HIDDEN)
    w2, b2 = linear(ks[2], ks[3], HIDDEN, HIDDEN)
    w3, b3 = linear(ks[4], ks[5], HIDDEN, ACTION_DIM)
    return (w1, b1, w2, b2, w3, b3)


def actor_reference_f32(x, params_f32):
    """Plain-JAX fp32 reference of the PyTorch forward."""
    w1, b1, w2, b2, w3, b3 = params_f32
    h = jnp.tanh(x @ w1 + b1)
    h = jnp.tanh(h @ w2 + b2)
    h = jnp.tanh(h @ w3 + b3)
    return h / 2.0


def actor_reference_bf16(x, kernel_params):
    """Precision-matched reference (same bf16 dot inputs / bf16 hidden tanh path)."""
    w1, b1, w2, b2, w3, b3 = kernel_params
    xb = x.astype(jnp.bfloat16)
    a1 = jnp.dot(xb, w1, preferred_element_type=jnp.float32) + b1
    h1 = jnp.tanh(a1.astype(jnp.bfloat16))
    a2 = jnp.dot(h1, w2, preferred_element_type=jnp.float32) + b2
    h2 = jnp.tanh(a2.astype(jnp.bfloat16))
    a3 = jnp.dot(h2, w3, preferred_element_type=jnp.float32) + b3
    return jnp.tanh(a3) * 0.5


if __name__ == "__main__":
    key = jax.random.PRNGKey(0)
    kp, kx = jax.random.split(key)
    params_f32 = init_params(kp)
    kernel_params = prepare_params(params_f32)

    # Primary small-shape check (batch=2, the RL inference case).
    batch = 2
    x = jax.random.normal(kx, (batch, STATE_DIM), jnp.float32)
    out = jax.block_until_ready(actor_forward(x, kernel_params))
    assert out.shape == (batch, ACTION_DIM)
    ref_bf16 = actor_reference_bf16(x, kernel_params)
    ref_f32 = actor_reference_f32(x, params_f32)
    assert jnp.allclose(out, ref_bf16, atol=2e-2, rtol=0), "mismatch vs bf16-matched ref"
    assert jnp.allclose(out, ref_f32, atol=5e-2, rtol=0), "mismatch vs fp32 ref"

    # Ragged / multi-tile check (exercises masked batch tail + 2-step grid path).
    x2 = jax.random.normal(jax.random.fold_in(kx, 1), (20, STATE_DIM), jnp.float32)
    out2 = jax.block_until_ready(actor_forward(x2, kernel_params, num_splits=2))
    assert out2.shape == (20, ACTION_DIM)
    assert jnp.allclose(out2, actor_reference_f32(x2, params_f32), atol=5e-2, rtol=0), \
        "mismatch vs fp32 ref (ragged/multi-tile)"

    print("KERNEL_OK")
</pallas_src>

<mosaic_0001>
module attributes {stable_mosaic.version = 11 : i64} {
  func.func @actor_kernel(%arg0: i32, %arg1: memref<8x29xf32, #tpu.memory_space<vmem>>, %arg2: memref<29x256xbf16, #tpu.memory_space<vmem>>, %arg3: memref<1x256xf32, #tpu.memory_space<vmem>>, %arg4: memref<256x256xbf16, #tpu.memory_space<vmem>>, %arg5: memref<1x256xf32, #tpu.memory_space<vmem>>, %arg6: memref<256x8xbf16, #tpu.memory_space<vmem>>, %arg7: memref<1x8xf32, #tpu.memory_space<vmem>>, %arg8: memref<8x8xf32, #tpu.memory_space<vmem>>) attributes {dimension_semantics = [#tpu.dimension_semantics<parallel>], iteration_bounds = array<i64: 1>, scalar_prefetch = 0 : i64, scratch_operands = 0 : i64, tpu.core_type = #tpu.core_type<tc>, window_params = [{transform_indices = @transform_0, window_bounds = array<i64: 8, 29>}, {pipeline_mode = #tpu.pipeline_mode<synchronous>, transform_indices = @transform_1, window_bounds = array<i64: 29, 256>}, {pipeline_mode = #tpu.pipeline_mode<synchronous>, transform_indices = @transform_2, window_bounds = array<i64: 1, 256>}, {pipeline_mode = #tpu.pipeline_mode<synchronous>, transform_indices = @transform_3, window_bounds = array<i64: 256, 256>}, {pipeline_mode = #tpu.pipeline_mode<synchronous>, transform_indices = @transform_4, window_bounds = array<i64: 1, 256>}, {pipeline_mode = #tpu.pipeline_mode<synchronous>, transform_indices = @transform_5, window_bounds = array<i64: 256, 8>}, {pipeline_mode = #tpu.pipeline_mode<synchronous>, transform_indices = @transform_6, window_bounds = array<i64: 1, 8>}, {transform_indices = @transform_7, window_bounds = array<i64: 8, 8>}]} {
    %c0 = arith.constant 0 : index
    %c0_0 = arith.constant 0 : index
    %0 = vector.load %arg1[%c0, %c0_0] : memref<8x29xf32, #tpu.memory_space<vmem>>, vector<8x29xf32>
    %1 = arith.truncf %0 : vector<8x29xf32> to vector<8x29xbf16>
    %c0_1 = arith.constant 0 : index
    %c0_2 = arith.constant 0 : index
    %2 = vector.load %arg2[%c0_1, %c0_2] : memref<29x256xbf16, #tpu.memory_space<vmem>>, vector<29x256xbf16>
    %cst = arith.constant dense<0.000000e+00> : vector<8x256xf32>
    %3 = tpu.matmul %1, %2, %cst {dimension_numbers = #tpu.dot_dimension_numbers<[1], [0], [0], [1], [0, 0, 1, 1], [], []>} : vector<8x29xbf16>, vector<29x256xbf16>, vector<8x256xf32> -> vector<8x256xf32>
    %c0_3 = arith.constant 0 : index
    %c0_4 = arith.constant 0 : index
    %4 = vector.load %arg3[%c0_3, %c0_4] : memref<1x256xf32, #tpu.memory_space<vmem>>, vector<1x256xf32>
    %5 = vector.broadcast %4 : vector<1x256xf32> to vector<8x256xf32>
    %6 = arith.addf %3, %5 : vector<8x256xf32>
    %7 = arith.truncf %6 : vector<8x256xf32> to vector<8x256xbf16>
    %8 = math.tanh %7 : vector<8x256xbf16>
    %c0_5 = arith.constant 0 : index
    %c0_6 = arith.constant 0 : index
    %9 = vector.load %arg4[%c0_5, %c0_6] : memref<256x256xbf16, #tpu.memory_space<vmem>>, vector<256x256xbf16>
    %cst_7 = arith.constant dense<0.000000e+00> : vector<8x256xf32>
    %10 = tpu.matmul %8, %9, %cst_7 {dimension_numbers = #tpu.dot_dimension_numbers<[1], [0], [0], [1], [0, 0, 1, 1], [], []>} : vector<8x256xbf16>, vector<256x256xbf16>, vector<8x256xf32> -> vector<8x256xf32>
    %c0_8 = arith.constant 0 : index
    %c0_9 = arith.constant 0 : index
    %11 = vector.load %arg5[%c0_8, %c0_9] : memref<1x256xf32, #tpu.memory_space<vmem>>, vector<1x256xf32>
    %12 = vector.broadcast %11 : vector<1x256xf32> to vector<8x256xf32>
    %13 = arith.addf %10, %12 : vector<8x256xf32>
    %14 = arith.truncf %13 : vector<8x256xf32> to vector<8x256xbf16>
    %15 = math.tanh %14 : vector<8x256xbf16>
    %c0_10 = arith.constant 0 : index
    %c0_11 = arith.constant 0 : index
    %16 = vector.load %arg6[%c0_10, %c0_11] : memref<256x8xbf16, #tpu.memory_space<vmem>>, vector<256x8xbf16>
    %cst_12 = arith.constant dense<0.000000e+00> : vector<8x8xf32>
    %17 = tpu.matmul %15, %16, %cst_12 {dimension_numbers = #tpu.dot_dimension_numbers<[1], [0], [0], [1], [0, 0, 1, 1], [], []>} : vector<8x256xbf16>, vector<256x8xbf16>, vector<8x8xf32> -> vector<8x8xf32>
    %c0_13 = arith.constant 0 : index
    %c0_14 = arith.constant 0 : index
    %18 = vector.load %arg7[%c0_13, %c0_14] : memref<1x8xf32, #tpu.memory_space<vmem>>, vector<1x8xf32>
    %19 = vector.broadcast %18 : vector<1x8xf32> to vector<8x8xf32>
    %20 = arith.addf %17, %19 : vector<8x8xf32>
    %21 = math.tanh %20 : vector<8x8xf32>
    %cst_15 = arith.constant 5.000000e-01 : f32
    %22 = vector.broadcast %cst_15 : f32 to vector<8x8xf32>
    %23 = arith.mulf %21, %22 : vector<8x8xf32>
    %c0_16 = arith.constant 0 : index
    %c0_17 = arith.constant 0 : index
    %24 = vector.load %arg8[%c0_16, %c0_17] : memref<8x8xf32, #tpu.memory_space<vmem>>, vector<8x8xf32>
    tpu.vector_store %arg8[%c0_16, %c0_17], %23 {strides = array<i32>} : memref<8x8xf32, #tpu.memory_space<vmem>>, vector<8x8xf32>,
    return
  }
  func.func @transform_0(%arg0: i32) -> (i32, i32) {
    %c0_i32 = arith.constant 0 : i32
    %c0_i32_0 = arith.constant 0 : i32
    return %arg0, %c0_i32 : i32, i32
  }
  func.func @transform_1(%arg0: i32) -> (i32, i32) {
    %c0_i32 = arith.constant 0 : i32
    %c0_i32_0 = arith.constant 0 : i32
    %c0_i32_1 = arith.constant 0 : i32
    return %c0_i32, %c0_i32_0 : i32, i32
  }
  func.func @transform_2(%arg0: i32) -> (i32, i32) {
    %c0_i32 = arith.constant 0 : i32
    %c0_i32_0 = arith.constant 0 : i32
    %c0_i32_1 = arith.constant 0 : i32
    return %c0_i32, %c0_i32_0 : i32, i32
  }
  func.func @transform_3(%arg0: i32) -> (i32, i32) {
    %c0_i32 = arith.constant 0 : i32
    %c0_i32_0 = arith.constant 0 : i32
    %c0_i32_1 = arith.constant 0 : i32
    return %c0_i32, %c0_i32_0 : i32, i32
  }
  func.func @transform_4(%arg0: i32) -> (i32, i32) {
    %c0_i32 = arith.constant 0 : i32
    %c0_i32_0 = arith.constant 0 : i32
    %c0_i32_1 = arith.constant 0 : i32
    return %c0_i32, %c0_i32_0 : i32, i32
  }
  func.func @transform_5(%arg0: i32) -> (i32, i32) {
    %c0_i32 = arith.constant 0 : i32
    %c0_i32_0 = arith.constant 0 : i32
    %c0_i32_1 = arith.constant 0 : i32
    return %c0_i32, %c0_i32_0 : i32, i32
  }
  func.func @transform_6(%arg0: i32) -> (i32, i32) {
    %c0_i32 = arith.constant 0 : i32
    %c0_i32_0 = arith.constant 0 : i32
    %c0_i32_1 = arith.constant 0 : i32
    return %c0_i32, %c0_i32_0 : i32, i32
  }
  func.func @transform_7(%arg0: i32) -> (i32, i32) {
    %c0_i32 = arith.constant 0 : i32
    %c0_i32_0 = arith.constant 0 : i32
    return %arg0, %c0_i32 : i32, i32
  }
}

</mosaic_0001>

<bundles_post_ra>
// kernel: actor_forward.1
= control target key start
LH: loop header
LB: loop body
LE: loop exit
PB: predicated region body
PF: predicated region fallthrough
CT: control target
= control target key end

     0   :  { %12 = vsyncpa [#allocation3], 0  ;;  %s938_s0 = inlined_call_operand.vmem [shape: f32[2,29], index: 0, kind: input, shape index: {}]   ;;  %s939_s1 = inlined_call_operand.vmem [shape: bf16[29,256], index: 1, kind: input, shape index: {}]   ;;  %s940_s2 = inlined_call_operand.vmem [shape: f32[1,256], index: 2, kind: input, shape index: {}]   ;;  %s941_s3 = inlined_call_operand.hbm [shape: bf16[256,256], index: 3, kind: input, shape index: {}]   ;;  %s942_s4 = inlined_call_operand.vmem [shape: f32[1,256], index: 4, kind: input, shape index: {}]   ;;  %s943_s5 = inlined_call_operand.vmem [shape: bf16[256,8], index: 5, kind: input, shape index: {}]   ;;  %s944_s6 = inlined_call_operand.vmem [shape: f32[1,8], index: 6, kind: input, shape index: {}]   ;;  %s945_s7 = inlined_call_operand.hbm [shape: f32[2,8], index: 7, kind: output, shape index: {}]  }
   0x1   :  { %13 = vsyncpa [#allocation4], 0  ;;  %s794_s24 = smov [#allocation2]   ;;  %s746_s28 = scalar_lea.hbm %s941_s3, 4096 }
   0x2   :  { %s25_s25 = sshll.u32 %s794_s24, 4  ;;  %p747_p0 = scmp.ne.s32.totalorder %s941_s3, %s746_s28  ;;  %s26_s25 = int_to_ptr.vmem [resolvable:$true] %s25_s25 }
   0x3   :  { %p750_p1 = scmp.lt.u32.totalorder %s746_s28, %s941_s3 }
   0x5   :  { %p752_p2 = pnand %p750_p1, %p747_p0 }
   0x7   :  { %755 = shalt.err (!%p752_p2)
}
   0x8   :  { %s756_s10 = scalar_lea.vmem %s26_s25, 4096  ;;  %p761_p4 = scmp.lt.s32.totalorder %s26_s25, %s26_s25 }
   0x9   :  { %p757_p3 = scmp.ne.s32.totalorder %s26_s25, %s756_s10  ;;  %p762_p5 = scmp.lt.s32.totalorder %s756_s10, %s756_s10 }
   0xb   :  { %p763_p6 = por %p762_p5, %p761_p4 }
   0xd   :  { %p764_p7 = pnand %p763_p6, %p757_p3 }
   0xf   :  { %767 = shalt.err (!%p764_p7)
}
  0x10   :  { %s795_s11 = smov 128   ;;  %s796_s12 = smov 8  }
  0x11   :  { %31 = dma.hbm_to_vmem [thread:$0]  %s941_s3, 4096, %s26_s25, [#allocation3], %s795_s11, %s795_s11, %s796_s12  }
  0x12   :  { %790 = dma.done.wait [#allocation3], 4096  }
  0x13   :  { %791 = vsyncadd [#allocation3], 4294963200  ;;  %v797_v0 = vmov 0   ;;  %vm82_vm0 = vcmask 1045504   ;;  %vm83_vm1 = vcmask 1046528   ;;  %v798_v1 = vmov 65535  }
  0x14   :  { %124 = vmatprep.mubr.bf16.mxu0 %v797_v0  ;;  %v84_v2 = vsel %vm82_vm0, 4294967295, %v798_v1  ;;  %v666_v3 = vld [vmem:[%s939_s1 + $0x4] ss:$8 sps:$4 sm:$0xff]   ;;  %v668_v4 = vld [vmem:[%s939_s1] ss:$8 sps:$4 sm:$0xff]   ;;  %vm78_vm2 = vcmask 236544   ;;  %v50_v51 = vlaneseq }
  0x15   :  { %v85_v5 = vsel %vm83_vm1, %v84_v2, 0  ;;  %92 = vmatprep.subr.bf16.mxu0 %v666_v3  ;;  %v669_v6 = vld [vmem:[%s939_s1 + $0x14] ss:$8 sps:$4 sm:$0x7f]   ;;  %v42_v8 = vld [vmem:[%s938_s0] sm:$0xff]  ;;  %v722_v46 = vld [vmem:[%s943_s5 + $0x48] sm:$0xff]  }
  0x16   :  { %v671_v7 = vld [vmem:[%s939_s1 + $0x10] ss:$8 sps:$4 sm:$0x7f]   ;;  %93 = vmatpush1.bf16.msra.mxu0 %v668_v4  ;;  %v90_v9 = vand.u32 %v669_v6, %v85_v5  ;;  %v672_v11 = vld [vmem:[#allocation2 + $0x4] ss:$8 sps:$4 sm:$0xff]   ;;  %v43_v14 = vpack.c.bf16 %v42_v8, %v42_v8  ;;  %v51_v52 = vshrl.u32 %v50_v51, 7 }
  0x17   :  { %v87_v10 = vand.u32 %v671_v7, %v85_v5  ;;  %v674_v12 = vld [vmem:[#allocation2] ss:$8 sps:$4 sm:$0xff]   ;;  %v675_v13 = vld [vmem:[#allocation2 + $0x14] ss:$8 sps:$4 sm:$0xff]   ;;  %341 = vmatprep.subr.bf16.mxu1 %v672_v11  ;;  %v677_v15 = vld [vmem:[#allocation2 + $0x10] ss:$8 sps:$4 sm:$0xff]  }
  0x18   :  { %94 = vmatprep.subr.bf16.mxu0 %v90_v9  ;;  %342 = vmatpush1.bf16.msra.mxu1 %v674_v12  ;;  %v678_v16 = vld [vmem:[#allocation2 + $0x24] ss:$8 sps:$4 sm:$0xff]   ;;  %v680_v17 = vld [vmem:[#allocation2 + $0x20] ss:$8 sps:$4 sm:$0xff]   ;;  %v681_v18 = vld [vmem:[#allocation2 + $0x34] ss:$8 sps:$4 sm:$0xff]  }
  0x19   :  { %343 = vmatprep.subr.bf16.mxu1 %v675_v13  ;;  %v683_v19 = vld [vmem:[#allocation2 + $0x30] ss:$8 sps:$4 sm:$0xff]   ;;  %v684_v20 = vld [vmem:[#allocation2 + $0x44] ss:$8 sps:$4 sm:$0xff]   ;;  %v686_v21 = vld [vmem:[#allocation2 + $0x40] ss:$8 sps:$4 sm:$0xff]  }
  0x1a   :  { %95 = vmatpush1.bf16.msra.mxu0 %v87_v10  ;;  %v687_v22 = vld [vmem:[#allocation2 + $0x54] ss:$8 sps:$4 sm:$0xff]   ;;  %v689_v23 = vld [vmem:[#allocation2 + $0x50] ss:$8 sps:$4 sm:$0xff]   ;;  %v690_v24 = vld [vmem:[#allocation2 + $0x64] ss:$8 sps:$4 sm:$0xff]  }
  0x1b   :  { %v692_v25 = vld [vmem:[#allocation2 + $0x60] ss:$8 sps:$4 sm:$0xff]   ;;  %v693_v26 = vld [vmem:[#allocation2 + $0x74] ss:$8 sps:$4 sm:$0xff]   ;;  %v695_v27 = vld [vmem:[#allocation2 + $0x70] ss:$8 sps:$4 sm:$0xff]  }
  0x1c   :  { %344 = vmatpush1.bf16.msra.mxu1 %v677_v15  ;;  %v696_v28 = vld [vmem:[#allocation2 + $0x84] ss:$8 sps:$4 sm:$0xff]   ;;  %v698_v29 = vld [vmem:[#allocation2 + $0x80] ss:$8 sps:$4 sm:$0xff]   ;;  %v699_v30 = vld [vmem:[#allocation2 + $0x94] ss:$8 sps:$4 sm:$0xff]  }
  0x1d   :  { %586 = vmatmul.mubr.msk.bf16.vlgmr.msra.gmra.mrb[0].mxu0 %vm78_vm2, %v43_v14  ;;  %345 = vmatprep.subr.bf16.mxu1 %v678_v16  ;;  %v701_v31 = vld [vmem:[#allocation2 + $0x90] ss:$8 sps:$4 sm:$0xff]   ;;  %v702_v32 = vld [vmem:[#allocation2 + $0xa4] ss:$8 sps:$4 sm:$0xff]   ;;  %v704_v33 = vld [vmem:[#allocation2 + $0xa0] ss:$8 sps:$4 sm:$0xff]  }
  0x1e   :  { %v705_v34 = vld [vmem:[#allocation2 + $0xb4] ss:$8 sps:$4 sm:$0xff]   ;;  %v707_v35 = vld [vmem:[#allocation2 + $0xb0] ss:$8 sps:$4 sm:$0xff]   ;;  %v708_v36 = vld [vmem:[#allocation2 + $0xc4] ss:$8 sps:$4 sm:$0xff]  }
  0x1f   :  { %v710_v37 = vld [vmem:[#allocation2 + $0xc0] ss:$8 sps:$4 sm:$0xff]   ;;  %v711_v38 = vld [vmem:[#allocation2 + $0xd4] ss:$8 sps:$4 sm:$0xff]   ;;  %v713_v39 = vld [vmem:[#allocation2 + $0xd0] ss:$8 sps:$4 sm:$0xff]  }
  0x20   :  { %346 = vmatpush1.bf16.msra.mxu1 %v680_v17  ;;  %v714_v40 = vld [vmem:[#allocation2 + $0xe4] ss:$8 sps:$4 sm:$0xff]   ;;  %v716_v41 = vld [vmem:[#allocation2 + $0xe0] ss:$8 sps:$4 sm:$0xff]   ;;  %v717_v42 = vld [vmem:[#allocation2 + $0xf4] ss:$8 sps:$4 sm:$0xff]  }
  0x21   :  { %347 = vmatprep.subr.bf16.mxu1 %v681_v18  ;;  %v719_v43 = vld [vmem:[#allocation2 + $0xf0] ss:$8 sps:$4 sm:$0xff]   ;;  %v720_v44 = vld [vmem:[%s943_s5 + $0x40] sm:$0xff]   ;;  %v723_v47 = vld [vmem:[%s943_s5 + $0x8] sm:$0xff]   ;;  %v52_v53 = vsub.s32 0, %v51_v52  ;;  %v56_v55 = vsub.s32 1, %v51_v52 }
  0x22   :  { %v721_v45 = vld [vmem:[%s943_s5] sm:$0xff]   ;;  %636 = vmatprep.subr.bf16.mxu0 %v720_v44  ;;  %v724_v48 = vld [vmem:[%s943_s5 + $0x50] sm:$0xff]   ;;  %v726_v50 = vld [vmem:[%s943_s5 + $0x58] sm:$0xff]   ;;  %vm563_vm3 = vcmask 64512  }
  0x23   :  { %637 = vmatpush3.bf16.msra.mxu0 %v721_v45  ;;  %v725_v49 = vld [vmem:[%s943_s5 + $0x10] sm:$0xff]   ;;  %v48_v54 = vld [vmem:[%s940_s2] sm:$0x3]  ;;  %v727_v4 = vld [vmem:[%s943_s5 + $0x18] sm:$0xff]  }
  0x24   :  { %348 = vmatpush1.bf16.msra.mxu1 %v683_v19  ;;  %638 = vmatprep.subr.bf16.mxu0 %v722_v46  ;;  %v53_v56 = vrot.slane %v48_v54, %v52_v53  ;;  %v57_v57 = vrot.slane %v48_v54, %v56_v55  ;;  %v728_v5 = vld [vmem:[%s943_s5 + $0x60] sm:$0xff]   ;;  %v730_v7 = vld [vmem:[%s943_s5 + $0x68] sm:$0xff]   ;;  %v732_v9 = vld [vmem:[%s943_s5 + $0x70] sm:$0xff]  }
  0x25   :  { %349 = vmatprep.subr.bf16.mxu1 %v684_v20  ;;  %v729_v6 = vld [vmem:[%s943_s5 + $0x20] sm:$0xff]   ;;  %v731_v8 = vld [vmem:[%s943_s5 + $0x28] sm:$0xff]   ;;  %v733_v10 = vld [vmem:[%s943_s5 + $0x30] sm:$0xff]  }
  0x26   :  { %v734_v11 = vld [vmem:[%s943_s5 + $0x78] sm:$0xff]   ;;  %v169_v13 = vld [vmem:[%s942_s4] sm:$0x3] }
  0x27   :  { %639 = vmatpush3.bf16.msra.mxu0 %v723_v47  ;;  %v735_v12 = vld [vmem:[%s943_s5 + $0x38] sm:$0xff]   ;;  %v174_v14 = vrot.slane %v169_v13, %v52_v53  ;;  %v178_v15 = vrot.slane %v169_v13, %v56_v55 }
  0x28   :  { %350 = vmatpush1.bf16.msra.mxu1 %v686_v21  ;;  %640 = vmatprep.subr.bf16.mxu0 %v724_v48 }
  0x29   :  { %351 = vmatprep.subr.bf16.mxu1 %v687_v22 }
  0x2b   :  { %641 = vmatpush3.bf16.msra.mxu0 %v725_v49 }
  0x2c   :  { %352 = vmatpush1.bf16.msra.mxu1 %v689_v23  ;;  %642 = vmatprep.subr.bf16.mxu0 %v726_v50 }
  0x2d   :  { %353 = vmatprep.subr.bf16.mxu1 %v690_v24 }
  0x2f   :  { %643 = vmatpush3.bf16.msra.mxu0 %v727_v4 }
  0x30   :  { %354 = vmatpush1.bf16.msra.mxu1 %v692_v25  ;;  %644 = vmatprep.subr.bf16.mxu0 %v728_v5 }
  0x31   :  { %355 = vmatprep.subr.bf16.mxu1 %v693_v26 }
  0x33   :  { %645 = vmatpush3.bf16.msra.mxu0 %v729_v6 }
  0x34   :  { %356 = vmatpush1.bf16.msra.mxu1 %v695_v27  ;;  %646 = vmatprep.subr.bf16.mxu0 %v730_v7  ;;  %v619_v27 = vld [vmem:[%s944_s6] ss:$0 sm:$0xff] }
  0x35   :  { %357 = vmatprep.subr.bf16.mxu1 %v696_v28 }
  0x37   :  { %647 = vmatpush3.bf16.msra.mxu0 %v731_v8 }
  0x38   :  { %358 = vmatpush1.bf16.msra.mxu1 %v698_v29  ;;  %648 = vmatprep.subr.bf16.mxu0 %v732_v9 }
  0x39   :  { %359 = vmatprep.subr.bf16.mxu1 %v699_v30 }
  0x3b   :  { %649 = vmatpush3.bf16.msra.mxu0 %v733_v10 }
  0x3c   :  { %360 = vmatpush1.bf16.msra.mxu1 %v701_v31  ;;  %650 = vmatprep.subr.bf16.mxu0 %v734_v11 }
  0x3d   :  { %361 = vmatprep.subr.bf16.mxu1 %v702_v32 }
  0x3f   :  { %651 = vmatpush3.bf16.msra.mxu0 %v735_v12 }
  0x40   :  { %362 = vmatpush1.bf16.msra.mxu1 %v704_v33 }
  0x41   :  { %363 = vmatprep.subr.bf16.mxu1 %v705_v34 }
  0x44   :  { %364 = vmatpush1.bf16.msra.mxu1 %v707_v35 }
  0x45   :  { %365 = vmatprep.subr.bf16.mxu1 %v708_v36 }
  0x48   :  { %366 = vmatpush1.bf16.msra.mxu1 %v710_v37 }
  0x49   :  { %367 = vmatprep.subr.bf16.mxu1 %v711_v38 }
  0x4c   :  { %368 = vmatpush1.bf16.msra.mxu1 %v713_v39 }
  0x4d   :  { %369 = vmatprep.subr.bf16.mxu1 %v714_v40 }
  0x50   :  { %370 = vmatpush1.bf16.msra.mxu1 %v716_v41 }
  0x51   :  { %371 = vmatprep.subr.bf16.mxu1 %v717_v42 }
  0x54   :  { %372 = vmatpush1.bf16.msra.mxu1 %v719_v43 }
  0xf0   :  { %v126_v58 = vpop.f32.mrb[0].mxu0 }
  0xf1   :  { %v127_v59 = vadd.f32 %v126_v58, %v53_v56  ;;  %v128_v60 = vpop.f32.mrb[1].mxu0 }
  0xf2   :  { %v129_v61 = vadd.f32 %v128_v60, %v57_v57  ;;  %v130_v62 = vpop.f32.mrb[2].mxu0 }
  0xf3   :  { %v133_v63 = vpack.c.bf16 %v127_v59, %v127_v59  ;;  %v131_v0 = vpop.f32.mrb[3].mxu0 }
  0xf4   :  { %v134_v1 = vpack.c.bf16 %v129_v61, %v129_v61 }
  0xf6   :  { %736 = vtanh.bf16 %v134_v1 }
  0xf7   :  { %738 = vtanh.bf16 %v133_v63 }
 0x101   :  { %v737_v2 = vpop.eup %736 }
 0x102   :  { %v739_v3 = vpop.eup %738  ;;  %373 = vmatprep.mubr.bf16.mxu1 %v737_v2 }
 0x103   :  { %374 = vmatmul.mubr.bf16.vlgmr.msra.gmra.mrb[0].mxu1 %v739_v3 }
 0x1d6   :  { %v375_v16 = vpop.f32.mrb[0].mxu1 }
 0x1d7   :  { %v376_v17 = vadd.f32 %v375_v16, %v174_v14  ;;  %v377_v18 = vpop.f32.mrb[1].mxu1 }
 0x1d8   :  { %v378_v19 = vadd.f32 %v377_v18, %v178_v15  ;;  %v379_v20 = vpop.f32.mrb[2].mxu1 }
 0x1d9   :  { %v382_v21 = vpack.c.bf16 %v376_v17, %v376_v17  ;;  %v380_v22 = vpop.f32.mrb[3].mxu1 }
 0x1da   :  { %v383_v23 = vpack.c.bf16 %v378_v19, %v378_v19 }
 0x1dc   :  { %740 = vtanh.bf16 %v383_v23 }
 0x1dd   :  { %742 = vtanh.bf16 %v382_v21 }
 0x1e7   :  { %v741_v24 = vpop.eup %740 }
 0x1e8   :  { %v743_v25 = vpop.eup %742  ;;  %553 = vmatprep.mubr.bf16.mxu0 %v741_v24 }
 0x1e9   :  { %554 = vmatmul.mubr.bf16.vlgmr.msra.gmra.mrb[4].mxu0 %v743_v25 }
 0x2bc   :  { %v652_v26 = vpop.f32.mrb[4].mxu0 }
 0x2bd   :  { %v653_v28 = vpop.f32.mrb[5].mxu0 }
 0x2be   :  { %v654_v29 = vadd.f32 %v653_v28, %v652_v26  ;;  %v655_v30 = vpop.f32.mrb[6].mxu0 }
 0x2bf   :  { %v656_v31 = vpop.f32.mrb[7].mxu0 }
 0x2c0   :  { %v556_v32 = vadd.f32 %v654_v29, %v619_v27 }
 0x2c2   :  { %744 = vtanh.f32 %v556_v32 }
 0x2cc   :  { %v745_v33 = vpop.eup %744 }
 0x2cd   :  { %v562_v34 = vmul.f32 0.5, %v745_v33 }
 0x2cf   :  { %564 = vst.msk [vmem:[#allocation5] sm:$0xff] %vm563_vm3, %v562_v34 }
 0x2d0   :  { %569 = vsyncadd [#allocation4], 96  ;;  %s799_s4 = smov [#allocation5]  }
 0x2d1   :  { %s570_s9 = sshll.u32 %s799_s4, 4  ;;  %s571_s9 = int_to_ptr.vmem [resolvable:$true] %s570_s9 }
 0x2d2   :  { %s768_s10 = scalar_lea.vmem %s571_s9, 32  ;;  %s772_s11 = scalar_lea.vmem %s571_s9, 128 }
 0x2d3   :  { %p769_p8 = scmp.ne.s32.totalorder %s571_s9, %s768_s10  ;;  %p773_p9 = scmp.lt.s32.totalorder %s571_s9, %s571_s9 }
 0x2d4   :  { %p774_p10 = scmp.lt.s32.totalorder %s772_s11, %s768_s10 }
 0x2d6   :  { %p775_p11 = por %p774_p10, %p773_p9 }
 0x2d8   :  { %p776_p12 = pnand %p775_p11, %p769_p8 }
 0x2da   :  { %779 = shalt.err (!%p776_p12)
}
 0x2db   :  { %s780_s13 = scalar_lea.hbm %s945_s7, 32 }
 0x2dc   :  { %p781_p13 = scmp.ne.s32.totalorder %s945_s7, %s780_s13  ;;  %p784_p0 = scmp.lt.u32.totalorder %s780_s13, %s945_s7 }
 0x2de   :  { %p786_p1 = pnand %p784_p0, %p781_p13 }
 0x2e0   :  { %789 = shalt.err (!%p786_p1)
}
 0x2e1   :  { %s800_s17 = smov 32   ;;  %s801_s18 = smov 2  }
 0x2e2   :  { %576 = dma.vmem_to_hbm [thread:$0]  %s571_s9, 32, %s945_s7, [#allocation4], %s800_s17, %s800_s17, %s801_s18  }
 0x2e3   :  { %792 = dma.done.wait [#allocation4], 128  }
 0x2e4   :  { %793 = vsyncadd [#allocation4], 4294967168 }
 0x2e5   :  { %580 = vsyncpa [#allocation3], 1 }
 0x2e6   :  { %581 = vsyncpa [#allocation4], 1 }

</bundles_post_ra>
